<compile_context>
chip_gen: v5e
topology: v5e:2x2
jax: 0.10.0
libtpu: 0.0.40
codegen_flags: <defaults>
</compile_context>

<pallas_src>
import jax
import jax.numpy as jnp
from jax.experimental import pallas as pl
from jax.experimental.pallas import tpu as pltpu


# ---------------------------------------------------------------------------
# Kernels
# ---------------------------------------------------------------------------

def _rowsum_kernel(x_ref, w_ref, b_ref, o_ref):
    """General path: one logit per row.  x:(TB,F)  w:(1,F)  b:(1,)SMEM  o:(TB,1)."""
    x = x_ref[...].astype(jnp.float32)          # in-kernel upcast (VPU, hidden under DMA)
    w = w_ref[...].astype(jnp.float32)          # (1, F) broadcasts over rows
    # VPU multiply + XLU cross-lane reduce; avoids an N=1 MXU matvec entirely.
    logits = jnp.sum(x * w, axis=-1, keepdims=True) + b_ref[0]
    o_ref[...] = jax.nn.sigmoid(logits).astype(o_ref.dtype)     # EUP slot


def _packed_kernel(x_ref, wsel_ref, b_ref, o_ref):
    """Lane-packed path for F < 128: k = 128 // F samples per VMEM row.
    x:(TB, k*F)  wsel:(k*F, k) weight folded into group-selection  o:(TB, k)."""
    x = x_ref[...].astype(jnp.float32)
    # Tiny constant matmul does the per-group contraction (K = k*F <= 128).
    logits = jnp.dot(x, wsel_ref[...], preferred_element_type=jnp.float32) + b_ref[0]
    o_ref[...] = jax.nn.sigmoid(logits).astype(o_ref.dtype)


# ---------------------------------------------------------------------------
# Wrapper
# ---------------------------------------------------------------------------

def _sublane_multiple(dtype):
    return {4: 8, 2: 16, 1: 32}.get(jnp.dtype(dtype).itemsize, 8)


def _choose_tile_rows(rows, feat, dtype, target_bytes):
    """Byte-budget-driven row tile (per x buffer; BlockSpec double-buffers it)."""
    sub = _sublane_multiple(dtype)
    itemsize = jnp.dtype(dtype).itemsize
    feat_vmem = max(128, -(-feat // 128) * 128)            # lane padding in VMEM
    budget = max(sub, (target_bytes // (feat_vmem * itemsize)) // sub * sub)
    if rows <= budget:
        # Whole batch fits one tile.  If it is big enough, split it into >=2
        # grid steps so the "parallel" axis can feed both v7x TensorCores.
        if rows > 4 * sub:
            half = -(-rows // 2)                            # ceil(rows / 2)
            return min(rows, -(-half // sub) * sub)         # round up to sublane
        return rows
    return budget


def server_model_forward(x, weight, bias, *, target_tile_bytes=4 << 20):
    """Forward pass of ServerModel.

    x: (B, F) float dtype; weight: (1, F) as in nn.Linear; bias: (1,).
    Returns sigmoid(x @ weight.T + bias), shape (B, 1), float32.
    """
    B, F = x.shape
    assert weight.shape[-1] == F

    b_smem = bias.reshape(1).astype(jnp.float32)            # scalar bias -> SMEM

    # Lane packing: for F < 128 pack k = 128 // F samples per VMEM row.
    k = 128 // F if (F < 128 and 128 % F == 0) else 1
    packed = (k > 1) and (B % k == 0)

    if packed:
        rows, feat, out_cols = B // k, k * F, k
        x_in = x.reshape(rows, feat)                        # contiguous => free reshape
        w_flat = weight.reshape(F).astype(jnp.float32)
        group = jnp.arange(feat, dtype=jnp.int32) // F      # which sample each lane feeds
        sel = group[:, None] == jnp.arange(k, dtype=jnp.int32)[None, :]
        w_op = sel.astype(jnp.float32) * jnp.tile(w_flat, k)[:, None]   # (k*F, k)
        kernel = _packed_kernel
    else:
        rows, feat, out_cols = B, F, 1
        x_in = x
        w_op = weight.reshape(1, F)                         # native nn.Linear layout
        kernel = _rowsum_kernel

    tile_rows = _choose_tile_rows(rows, feat, x.dtype, target_tile_bytes)
    grid = (pl.cdiv(rows, tile_rows),)     # ragged last block is masked by Pallas

    itemsize = jnp.dtype(x.dtype).itemsize
    cost = pl.CostEstimate(
        flops=2 * B * F,
        transcendentals=B,
        bytes_accessed=B * F * itemsize
        + w_op.size * jnp.dtype(w_op.dtype).itemsize
        + 4                       # bias
        + 4 * B,                  # output
    )

    out = pl.pallas_call(
        kernel,
        out_shape=jax.ShapeDtypeStruct((rows, out_cols), jnp.float32),
        grid=grid,
        in_specs=[
            pl.BlockSpec((tile_rows, feat), lambda i: (i, 0)),    # x tile (pipelined)
            pl.BlockSpec(w_op.shape, lambda i: (0, 0)),           # weight (resident)
            pl.BlockSpec(memory_space=pltpu.MemorySpace.SMEM),    # bias scalar
        ],
        out_specs=pl.BlockSpec((tile_rows, out_cols), lambda i: (i, 0)),
        compiler_params=pltpu.CompilerParams(
            # Megacore split of the batch on v7x; single-TC chips ignore it.
            dimension_semantics=("parallel",),
            # 2 x 4 MiB x-buffers + weight + output fit the default scoped-VMEM
            # limit on v5e/v6e/v7x, so no vmem_limit_bytes override is needed.
        ),
        cost_estimate=cost,
    )(x_in, w_op, b_smem)

    return out.reshape(B, 1)


# ---------------------------------------------------------------------------
# Self-test
# ---------------------------------------------------------------------------

if __name__ == "__main__":
    key = jax.random.PRNGKey(0)

    def init_params(k, F):
        kw, kb = jax.random.split(k)
        bound = 1.0 / (F ** 0.5)      # nn.Linear default: U(-1/sqrt(F), 1/sqrt(F))
        w = jax.random.uniform(kw, (1, F), minval=-bound, maxval=bound,
                               dtype=jnp.float32)
        b = jax.random.uniform(kb, (1,), minval=-bound, maxval=bound,
                               dtype=jnp.float32)
        return w, b

    def reference(x, w, b):
        return jax.nn.sigmoid(x.astype(jnp.float32) @ w.T + b)

    cases = [
        (8, 32, jnp.float32),      # module-default shapes: packed path, single tile
        (9, 32, jnp.float32),      # B % k != 0 -> general row-sum path
        (1000, 32, jnp.float32),   # packed path, multi-step grid with ragged tail
        (64, 32, jnp.bfloat16),    # half-width input, in-kernel f32 upcast
    ]

    for i, (B, F, dt) in enumerate(cases):
        kx, kp, key = jax.random.split(key, 3)
        x = jax.random.normal(kx, (B, F), dtype=jnp.float32).astype(dt)
        w, b = init_params(kp, F)

        out = jax.block_until_ready(server_model_forward(x, w, b))
        ref = reference(x, w, b)

        atol = 2e-2 if dt == jnp.bfloat16 else 1e-5
        assert out.shape == (B, 1), (out.shape, (B, 1))
        assert jnp.allclose(out, ref, atol=atol, rtol=1e-3), f"case {i} mismatch"

    print("KERNEL_OK")
</pallas_src>

<mosaic_0001>
module attributes {stable_mosaic.version = 11 : i64} {
  func.func @_packed_kernel(%arg0: i32, %arg1: memref<2x128xf32, #tpu.memory_space<vmem>>, %arg2: memref<128x4xf32, #tpu.memory_space<vmem>>, %arg3: memref<1xf32, #tpu.memory_space<smem>>, %arg4: memref<2x4xf32, #tpu.memory_space<vmem>>) attributes {dimension_semantics = [#tpu.dimension_semantics<parallel>], iteration_bounds = array<i64: 1>, scalar_prefetch = 0 : i64, scratch_operands = 0 : i64, tpu.core_type = #tpu.core_type<tc>, window_params = [{transform_indices = @transform_0, window_bounds = array<i64: 2, 128>}, {pipeline_mode = #tpu.pipeline_mode<synchronous>, transform_indices = @transform_1, window_bounds = array<i64: 128, 4>}, {transform_indices = @transform_2, window_bounds = array<i64: 1>}, {transform_indices = @transform_3, window_bounds = array<i64: 2, 4>}]} {
    %c0 = arith.constant 0 : index
    %c0_0 = arith.constant 0 : index
    %0 = vector.load %arg1[%c0, %c0_0] : memref<2x128xf32, #tpu.memory_space<vmem>>, vector<2x128xf32>
    %c0_1 = arith.constant 0 : index
    %c0_2 = arith.constant 0 : index
    %1 = vector.load %arg2[%c0_1, %c0_2] : memref<128x4xf32, #tpu.memory_space<vmem>>, vector<128x4xf32>
    %cst = arith.constant dense<0.000000e+00> : vector<2x4xf32>
    %2 = tpu.matmul %0, %1, %cst {dimension_numbers = #tpu.dot_dimension_numbers<[1], [0], [0], [1], [0, 0, 1, 1], [], []>} : vector<2x128xf32>, vector<128x4xf32>, vector<2x4xf32> -> vector<2x4xf32>
    %c0_3 = arith.constant 0 : index
    %3 = memref.load %arg3[%c0_3] : memref<1xf32, #tpu.memory_space<smem>>
    %4 = vector.broadcast %3 : f32 to vector<2x4xf32>
    %5 = arith.addf %2, %4 : vector<2x4xf32>
    %6 = arith.negf %5 : vector<2x4xf32>
    %7 = math.exp %6 : vector<2x4xf32>
    %cst_4 = arith.constant 1.000000e+00 : f32
    %8 = vector.broadcast %cst_4 : f32 to vector<2x4xf32>
    %9 = arith.addf %8, %7 : vector<2x4xf32>
    %10 = arith.divf %8, %9 : vector<2x4xf32>
    %c0_5 = arith.constant 0 : index
    %c0_6 = arith.constant 0 : index
    %11 = vector.load %arg4[%c0_5, %c0_6] : memref<2x4xf32, #tpu.memory_space<vmem>>, vector<2x4xf32>
    tpu.vector_store %arg4[%c0_5, %c0_6], %10 {strides = array<i32>} : memref<2x4xf32, #tpu.memory_space<vmem>>, vector<2x4xf32>,
    return
  }
  func.func @transform_0(%arg0: i32) -> (i32, i32) {
    %c0_i32 = arith.constant 0 : i32
    %c0_i32_0 = arith.constant 0 : i32
    return %arg0, %c0_i32 : i32, i32
  }
  func.func @transform_1(%arg0: i32) -> (i32, i32) {
    %c0_i32 = arith.constant 0 : i32
    %c0_i32_0 = arith.constant 0 : i32
    %c0_i32_1 = arith.constant 0 : i32
    return %c0_i32, %c0_i32_0 : i32, i32
  }
  func.func @transform_2(%arg0: i32) -> i32 {
    %c0_i32 = arith.constant 0 : i32
    %c0_i32_0 = arith.constant 0 : i32
    return %c0_i32 : i32
  }
  func.func @transform_3(%arg0: i32) -> (i32, i32) {
    %c0_i32 = arith.constant 0 : i32
    %c0_i32_0 = arith.constant 0 : i32
    return %arg0, %c0_i32 : i32, i32
  }
}

</mosaic_0001>

<bundles_post_ra>
// kernel: tpu_custom_call.1
= control target key start
LH: loop header
LB: loop body
LE: loop exit
PB: predicated region body
PF: predicated region fallthrough
CT: control target
= control target key end

     0   :  { %s202_s0 = inlined_call_operand.vmem [shape: f32[2,128], index: 0, kind: input, shape index: {}]   ;;  %s203_s1 = inlined_call_operand.vmem [shape: f32[128,4], index: 1, kind: input, shape index: {}]   ;;  %s204_s2 = inlined_call_operand.<no memory space> [shape: f32[1], index: 2, kind: input, shape index: {}]   ;;  %s205_s3 = inlined_call_operand.hbm [shape: f32[2,4], index: 3, kind: output, shape index: {}]  }
   0x1   :  { %v32_v0 = vld [vmem:[%s203_s1 + $0x78] sm:$0xff]  ;;  %v31_v1 = vld [vmem:[%s203_s1 + $0x70] sm:$0xff]  ;;  %v30_v2 = vld [vmem:[%s203_s1 + $0x68] sm:$0xff] }
   0x2   :  { %35 = vmatpush.msra.mxu0 %v32_v0  ;;  %v29_v3 = vld [vmem:[%s203_s1 + $0x60] sm:$0xff] }
   0x4   :  { %36 = vmatpush.msra.mxu0 %v31_v1 }
   0x6   :  { %37 = vmatpush.msra.mxu0 %v30_v2 }
   0x7   :  { %9 = vsyncpa [#allocation4], 0  ;;  %v28_v4 = vld [vmem:[%s203_s1 + $0x58] sm:$0xff]  ;;  %v27_v5 = vld [vmem:[%s203_s1 + $0x50] sm:$0xff]  ;;  %v34_v17 = vstv %s204_s2  ;;  %s83_s2 = sshll.u32 %s205_s3, 4  ;;  %vm74_vm3 = vcmask 25600   ;;  %s84_s2 = int_to_ptr.hbm [resolvable:$true] %s83_s2 }
   0x8   :  { %38 = vmatpush.msra.mxu0 %v29_v3  ;;  %v26_v6 = vld [vmem:[%s203_s1 + $0x48] sm:$0xff]  ;;  %v25_v7 = vld [vmem:[%s203_s1 + $0x40] sm:$0xff]  ;;  %v24_v8 = vld [vmem:[%s203_s1 + $0x38] sm:$0xff] }
   0x9   :  { %v23_v9 = vld [vmem:[%s203_s1 + $0x30] sm:$0xff]  ;;  %v22_v10 = vld [vmem:[%s203_s1 + $0x28] sm:$0xff]  ;;  %v21_v11 = vld [vmem:[%s203_s1 + $0x20] sm:$0xff] }
   0xa   :  { %39 = vmatpush.msra.mxu0 %v28_v4  ;;  %v20_v12 = vld [vmem:[%s203_s1 + $0x18] sm:$0xff]  ;;  %v19_v13 = vld [vmem:[%s203_s1 + $0x10] sm:$0xff]  ;;  %v18_v14 = vld [vmem:[%s203_s1 + $0x8] sm:$0xff] }
   0xb   :  { %v17_v15 = vld [vmem:[%s203_s1] sm:$0xff] }
   0xc   :  { %40 = vmatpush.msra.mxu0 %v27_v5  ;;  %v16_v16 = vld [vmem:[%s202_s0] sm:$0x3]  ;;  %s124_s0 = smov [#allocation3]  }
   0xd   :  { %s81_s1 = sshll.u32 %s124_s0, 4  ;;  %s82_s1 = int_to_ptr.vmem [resolvable:$true] %s81_s1 }
   0xe   :  { %41 = vmatpush.msra.mxu0 %v26_v6 }
  0x10   :  { %42 = vmatpush.msra.mxu0 %v25_v7 }
  0x12   :  { %43 = vmatpush.msra.mxu0 %v24_v8 }
  0x14   :  { %44 = vmatpush.msra.mxu0 %v23_v9 }
  0x16   :  { %45 = vmatpush.msra.mxu0 %v22_v10 }
  0x18   :  { %46 = vmatpush.msra.mxu0 %v21_v11 }
  0x1a   :  { %47 = vmatpush.msra.mxu0 %v20_v12 }
  0x1c   :  { %48 = vmatpush.msra.mxu0 %v19_v13 }
  0x1e   :  { %49 = vmatpush.msra.mxu0 %v18_v14 }
  0x20   :  { %50 = vmatpush.msra.mxu0 %v17_v15 }
  0x21   :  { %51 = vmatmul.f32.vlgmr.msra.gmra.mxu0 %v16_v16 }
  0x9e   :  { %v52_v18 = vpop.f32.mrf.mxu0 }
  0x9f   :  { %v53_v19 = vadd.f32 %v52_v18, %v34_v17 }
  0xa1   :  { %v92_v20 = vmul.f32 -1.442695, %v53_v19 }
  0xa3   :  { %94 = vpow2.f32 %v92_v20 }
  0xa9   :  { %v95_v21 = vpop.eup %94 }
  0xaa   :  { %v58_v22 = vadd.f32 1.0, %v95_v21 }
  0xac   :  { %96 = vrcp.f32 %v58_v22  ;;  %v70_v26 = vand.u32 2147483648, %v58_v22  ;;  %v68_v28 = vand.u32 2147483647, %v58_v22  ;;  %vm64_vm1 = vweird.f32 %v58_v22 }
  0xae   :  { %v71_v30 = vor.u32 1.1754944e-38, %v70_v26  ;;  %vm69_vm4 = vcmp.eq.f32.partialorder %v68_v28, 8.507059e+37 }
  0xb2   :  { %v97_v23 = vpop.eup %96 }
  0xb3   :  { %v60_v24 = vmul.f32 %v97_v23, %v58_v22  ;;  %vm65_vm0 = vweird.f32 %v97_v23 }
  0xb4   :  { %vm66_vm2 = vmor %vm64_vm1, %vm65_vm0 }
  0xb5   :  { %v61_v25 = vsub.f32 1.0, %v60_v24 }
  0xb7   :  { %v62_v27 = vmul.f32 %v97_v23, %v61_v25 }
  0xb9   :  { %v63_v29 = vadd.f32 %v97_v23, %v62_v27 }
  0xbb   :  { %v67_v31 = vsel %vm66_vm2, %v97_v23, %v63_v29 }
  0xbc   :  { %v72_v32 = vsel %vm69_vm4, %v71_v30, %v67_v31 }
  0xbd   :  { %75 = vst.msk [vmem:[#allocation3] sm:$0x3] %vm74_vm3, %v72_v32 }
  0xbe   :  { %86 = dma.vmem_to_hbm [thread:$0]  %s82_s1, 32, %s84_s2, [#allocation4]  }
  0xbf   :  { %122 = dma.done.wait [#allocation4], 32  }
  0xc0   :  { %123 = vsyncadd [#allocation4], 4294967264 }
  0xc1   :  { %91 = vsyncpa [#allocation4], 1 }

</bundles_post_ra>
